<compile_context>
chip_gen: v6e
topology: v6e:2x2x1
jax: 0.10.0
libtpu: 0.0.40
codegen_flags: <defaults>
</compile_context>

<pallas_src>
import numpy as np
import jax
import jax.numpy as jnp
from jax.experimental import pallas as pl
from jax.experimental.pallas import tpu as pltpu

MC_ONLY, ML_ONLY, MIXED = 0, 1, 2
NDSP = 128  # padded dataset-table rows (MXU-friendly one-hot contraction dim)


def _round_up(x, m):
    return ((x + m - 1) // m) * m


def _mixed_loss_kernel(mode_ref, ids_ref, isml_ref, pred_ref, targ_ref,
                       table_ref, posw_ref, loss_ref, valid_ref):
    mode = mode_ref[pl.program_id(0)]            # SMEM scalar: tile composition

    x = pred_ref[...].astype(jnp.float32)        # (TB, C) logits
    z = targ_ref[...].astype(jnp.float32)        # (TB, C) targets
    ids = ids_ref[...]                           # (TB, 1) int32 dataset id
    is_ml = isml_ref[...]                        # (TB, 1) 1.0 = multilabel sample
    pw = posw_ref[...]                           # (1, C)  pos_weight

    # Rebuild the per-sample valid-label mask on-chip: one_hot(dataset_id) @ mask_table.
    tb = x.shape[0]
    ds_iota = jax.lax.broadcasted_iota(jnp.int32, (tb, table_ref.shape[0]), 1)
    onehot = (ids == ds_iota).astype(jnp.float32)                       # (TB, NDSP)
    m = jnp.dot(onehot, table_ref[...], preferred_element_type=jnp.float32)  # (TB, C)

    valid_count = jnp.sum(m, axis=-1, keepdims=True)                    # (TB, 1)
    has_valid = (valid_count > 0).astype(jnp.float32)                   # (TB, 1)

    loss_ref[...] = jnp.zeros_like(loss_ref)
    valid_ref[...] = has_valid

    # ---- multilabel path: BCEWithLogits(reduction='none') * pos_weight, mean over valid labels
    @pl.when(mode != MC_ONLY)       # tile contains at least one multilabel sample
    def _():
        bce = jnp.maximum(x, 0.0) - x * z + jnp.log(1.0 + jnp.exp(-jnp.abs(x)))
        ml = jnp.sum(bce * pw * m, axis=-1, keepdims=True) / jnp.maximum(valid_count, 1.0)
        loss_ref[...] = loss_ref[...] + jnp.where(is_ml > 0, ml, 0.0) * has_valid

    # ---- multiclass path: CrossEntropy over valid subset, target = argmax of valid targets
    @pl.when(mode != ML_ONLY)       # tile contains at least one multiclass sample
    def _():
        neg_big = jnp.float32(-1e30)
        valid = m > 0
        xmax = jnp.max(jnp.where(valid, x, neg_big), axis=-1, keepdims=True)
        xmax = jnp.where(valid_count > 0, xmax, 0.0)
        sum_exp = jnp.sum(jnp.where(valid, jnp.exp(x - xmax), 0.0), axis=-1, keepdims=True)
        lse = xmax + jnp.log(jnp.maximum(sum_exp, 1e-30))

        tmax = jnp.max(jnp.where(valid, z, neg_big), axis=-1, keepdims=True)
        cdim = x.shape[-1]
        iota = jax.lax.broadcasted_iota(jnp.int32, x.shape, 1)
        is_max = valid & (z >= tmax)                          # first-occurrence argmax tie-break
        first_idx = jnp.min(jnp.where(is_max, iota, cdim), axis=-1, keepdims=True)
        chosen = jnp.sum(jnp.where(iota == first_idx, x, 0.0), axis=-1, keepdims=True)
        mc = lse - chosen
        loss_ref[...] = loss_ref[...] + jnp.where(is_ml > 0, 0.0, mc) * has_valid


def mixed_classification_loss(predictions, targets, ds_ids, is_ml, mask_table,
                              pos_weight, *, tb=1024):
    """predictions/targets: (B, C) f32; ds_ids: (B, 1) int32; is_ml: (B, 1) f32;
    mask_table: (NDSP, C) f32 (row d = valid-label mask of dataset d, zero-padded);
    pos_weight: (1, C) f32."""
    B, C = predictions.shape
    assert C % 128 == 0
    assert mask_table.shape == (NDSP, C)

    TB = max(8, min(int(tb), _round_up(B, 8)))   # large sublane tile; sweep 512-2048 for big B
    Bp = _round_up(B, TB)
    if Bp != B:
        pad = Bp - B
        predictions = jnp.concatenate(
            [predictions, jnp.zeros((pad, C), predictions.dtype)], axis=0)
        targets = jnp.concatenate(
            [targets, jnp.zeros((pad, C), targets.dtype)], axis=0)
        # padded rows point at an all-zero mask-table row -> has_valid = 0, contribute nothing
        ds_ids = jnp.concatenate(
            [ds_ids, jnp.full((pad, 1), NDSP - 1, jnp.int32)], axis=0)
        is_ml = jnp.concatenate(
            [is_ml, jnp.zeros((pad, 1), is_ml.dtype)], axis=0)
    G = Bp // TB

    # Per-tile mode (scalar-prefetched into SMEM): lets pure tiles skip one loss path.
    flags = (is_ml[:, 0] > 0).reshape(G, TB)
    any_ml = jnp.any(flags, axis=1)
    all_ml = jnp.all(flags, axis=1)
    modes = jnp.where(all_ml, ML_ONLY, jnp.where(any_ml, MIXED, MC_ONLY)).astype(jnp.int32)

    per_loss, per_valid = pl.pallas_call(
        _mixed_loss_kernel,
        out_shape=(jax.ShapeDtypeStruct((Bp, 1), jnp.float32),
                   jax.ShapeDtypeStruct((Bp, 1), jnp.float32)),
        grid_spec=pltpu.PrefetchScalarGridSpec(
            num_scalar_prefetch=1,
            grid=(G,),
            in_specs=[
                pl.BlockSpec((TB, 1), lambda i, _m: (i, 0)),    # dataset ids
                pl.BlockSpec((TB, 1), lambda i, _m: (i, 0)),    # multilabel flag
                pl.BlockSpec((TB, C), lambda i, _m: (i, 0)),    # predictions
                pl.BlockSpec((TB, C), lambda i, _m: (i, 0)),    # targets
                pl.BlockSpec((NDSP, C), lambda i, _m: (0, 0)),  # mask table (resident)
                pl.BlockSpec((1, C), lambda i, _m: (0, 0)),     # pos_weight (resident)
            ],
            out_specs=[
                pl.BlockSpec((TB, 1), lambda i, _m: (i, 0)),    # per-sample loss
                pl.BlockSpec((TB, 1), lambda i, _m: (i, 0)),    # per-sample valid flag
            ],
        ),
        compiler_params=pltpu.CompilerParams(dimension_semantics=("parallel",)),
    )(modes, ds_ids, is_ml, predictions, targets, mask_table, pos_weight)

    # Tiny final reduction + divide in plain JAX (keeps the grid axis carry-free/parallel).
    loss_sum = jnp.sum(per_loss)
    cnt = jnp.sum(per_valid)
    return jnp.where(cnt > 0, loss_sum / jnp.maximum(cnt, 1.0), jnp.float32(0.0))


def build_dataset_metadata(dataset_label_indices, multilabel_datasets, num_classes):
    """Host-side glue: dataset-name dicts -> dense id map, (NDSP, C) mask table, per-dataset ML flag."""
    names = sorted(dataset_label_indices.keys())
    assert len(names) <= NDSP
    name_to_id = {n: i for i, n in enumerate(names)}
    table = np.zeros((NDSP, num_classes), np.float32)
    is_ml_per_ds = np.zeros((NDSP,), np.float32)
    for n, i in name_to_id.items():
        for c in dataset_label_indices[n]:
            table[i, c] = 1.0
        if n in multilabel_datasets:
            is_ml_per_ds[i] = 1.0
    return name_to_id, table, is_ml_per_ds


def numpy_reference(preds, targs, datasets, dataset_label_indices,
                    multilabel_datasets, pos_weight):
    """Pure-numpy reproduction of the PyTorch forward semantics."""
    total, valid = 0.0, 0
    for b, d in enumerate(datasets):
        idx = dataset_label_indices[d]
        if not idx:
            continue
        p = preds[b, idx].astype(np.float64)
        t = targs[b, idx].astype(np.float64)
        if d in multilabel_datasets:
            bce = np.maximum(p, 0.0) - p * t + np.log1p(np.exp(-np.abs(p)))
            total += float((bce * pos_weight[0, idx]).mean())
        else:
            ti = int(np.argmax(t))
            pmax = p.max()
            lse = pmax + np.log(np.sum(np.exp(p - pmax)))
            total += float(lse - p[ti])
        valid += 1
    return total / valid if valid > 0 else 0.0


if __name__ == "__main__":
    B, C = 16, 128

    dataset_label_indices = {
        "ml_a": list(range(0, 10)),
        "ml_b": list(range(10, 30)),
        "mc_a": list(range(30, 50)),
        "mc_empty": [],                 # empty -> sample skipped (not counted)
    }
    multilabel_datasets = {"ml_a", "ml_b"}
    datasets = [["ml_a", "mc_a", "ml_b", "mc_empty"][b % 4] for b in range(B)]
    pos_weight_np = np.linspace(0.5, 1.5, C).astype(np.float32)[None, :]

    name_to_id, table_np, isml_per_ds = build_dataset_metadata(
        dataset_label_indices, multilabel_datasets, C)

    key = jax.random.PRNGKey(0)
    k1, k2 = jax.random.split(key)
    preds_np = np.asarray(jax.random.normal(k1, (B, C), dtype=jnp.float32))
    targ_np = np.asarray(jax.random.uniform(k2, (B, C), dtype=jnp.float32))

    ids_np = np.array([[name_to_id[d]] for d in datasets], np.int32)
    isml_np = isml_per_ds[ids_np[:, 0]][:, None].astype(np.float32)
    # binarize targets for multilabel rows (BCE targets)
    targ_np = np.where(isml_np > 0, np.round(targ_np), targ_np).astype(np.float32)

    table_j = jnp.asarray(table_np)
    posw_j = jnp.asarray(pos_weight_np)

    # 1) single mixed tile (both dataset types in one tile -> both pl.when branches run)
    loss = mixed_classification_loss(
        jnp.asarray(preds_np), jnp.asarray(targ_np),
        jnp.asarray(ids_np), jnp.asarray(isml_np), table_j, posw_j)
    loss = float(jax.block_until_ready(loss))
    ref = numpy_reference(preds_np, targ_np, datasets, dataset_label_indices,
                          multilabel_datasets, pos_weight_np)
    np.testing.assert_allclose(loss, ref, rtol=1e-4, atol=1e-5)

    # 2) batch grouped by dataset type + small tile -> exercises ML-only / MC-only gated tiles
    order = np.argsort(-isml_np[:, 0], kind="stable")
    loss2 = mixed_classification_loss(
        jnp.asarray(preds_np[order]), jnp.asarray(targ_np[order]),
        jnp.asarray(ids_np[order]), jnp.asarray(isml_np[order]),
        table_j, posw_j, tb=8)
    loss2 = float(jax.block_until_ready(loss2))
    np.testing.assert_allclose(loss2, ref, rtol=1e-4, atol=1e-5)

    # 3) batch size not a multiple of the tile -> exercises the padding path
    Bs = 12
    loss3 = mixed_classification_loss(
        jnp.asarray(preds_np[:Bs]), jnp.asarray(targ_np[:Bs]),
        jnp.asarray(ids_np[:Bs]), jnp.asarray(isml_np[:Bs]), table_j, posw_j)
    loss3 = float(jax.block_until_ready(loss3))
    ref3 = numpy_reference(preds_np[:Bs], targ_np[:Bs], datasets[:Bs],
                           dataset_label_indices, multilabel_datasets, pos_weight_np)
    np.testing.assert_allclose(loss3, ref3, rtol=1e-4, atol=1e-5)

    print("KERNEL_OK")
</pallas_src>

<mosaic_0001>
module attributes {stable_mosaic.version = 11 : i64} {
  func.func @_mixed_loss_kernel(%arg0: i32, %arg1: memref<1xi32, #tpu.memory_space<smem>>, %arg2: memref<16x1xi32, #tpu.memory_space<vmem>>, %arg3: memref<16x1xf32, #tpu.memory_space<vmem>>, %arg4: memref<16x128xf32, #tpu.memory_space<vmem>>, %arg5: memref<16x128xf32, #tpu.memory_space<vmem>>, %arg6: memref<128x128xf32, #tpu.memory_space<vmem>>, %arg7: memref<1x128xf32, #tpu.memory_space<vmem>>, %arg8: memref<16x1xf32, #tpu.memory_space<vmem>>, %arg9: memref<16x1xf32, #tpu.memory_space<vmem>>) attributes {dimension_semantics = [#tpu.dimension_semantics<parallel>], iteration_bounds = array<i64: 1>, scalar_prefetch = 1 : i64, scratch_operands = 0 : i64, tpu.core_type = #tpu.core_type<tc>, window_params = [{transform_indices = @transform_0, window_bounds = array<i64: 16, 1>}, {transform_indices = @transform_1, window_bounds = array<i64: 16, 1>}, {transform_indices = @transform_2, window_bounds = array<i64: 16, 128>}, {transform_indices = @transform_3, window_bounds = array<i64: 16, 128>}, {pipeline_mode = #tpu.pipeline_mode<synchronous>, transform_indices = @transform_4, window_bounds = array<i64: 128, 128>}, {pipeline_mode = #tpu.pipeline_mode<synchronous>, transform_indices = @transform_5, window_bounds = array<i64: 1, 128>}, {transform_indices = @transform_6, window_bounds = array<i64: 16, 1>}, {transform_indices = @transform_7, window_bounds = array<i64: 16, 1>}]} {
    %0 = arith.index_cast %arg0 : i32 to index
    %1 = memref.load %arg1[%0] : memref<1xi32, #tpu.memory_space<smem>>
    %c0 = arith.constant 0 : index
    %c0_0 = arith.constant 0 : index
    %2 = vector.load %arg4[%c0, %c0_0] : memref<16x128xf32, #tpu.memory_space<vmem>>, vector<16x128xf32>
    %c0_1 = arith.constant 0 : index
    %c0_2 = arith.constant 0 : index
    %3 = vector.load %arg5[%c0_1, %c0_2] : memref<16x128xf32, #tpu.memory_space<vmem>>, vector<16x128xf32>
    %c0_3 = arith.constant 0 : index
    %c0_4 = arith.constant 0 : index
    %4 = vector.load %arg2[%c0_3, %c0_4] : memref<16x1xi32, #tpu.memory_space<vmem>>, vector<16x1xi32>
    %c0_5 = arith.constant 0 : index
    %c0_6 = arith.constant 0 : index
    %5 = vector.load %arg3[%c0_5, %c0_6] : memref<16x1xf32, #tpu.memory_space<vmem>>, vector<16x1xf32>
    %c0_7 = arith.constant 0 : index
    %c0_8 = arith.constant 0 : index
    %6 = vector.load %arg7[%c0_7, %c0_8] : memref<1x128xf32, #tpu.memory_space<vmem>>, vector<1x128xf32>
    %7 = tpu.iota {dimensions = array<i32: 1>} : vector<16x128xi32>
    %8 = vector.broadcast %4 : vector<16x1xi32> to vector<16x128xi32>
    %9 = arith.cmpi eq, %8, %7 : vector<16x128xi32>
    %10 = arith.extui %9 : vector<16x128xi1> to vector<16x128xi32>
    %11 = arith.sitofp %10 : vector<16x128xi32> to vector<16x128xf32>
    %c0_9 = arith.constant 0 : index
    %c0_10 = arith.constant 0 : index
    %12 = vector.load %arg6[%c0_9, %c0_10] : memref<128x128xf32, #tpu.memory_space<vmem>>, vector<128x128xf32>
    %cst = arith.constant dense<0.000000e+00> : vector<16x128xf32>
    %13 = tpu.matmul %11, %12, %cst {dimension_numbers = #tpu.dot_dimension_numbers<[1], [0], [0], [1], [0, 0, 1, 1], [], []>} : vector<16x128xf32>, vector<128x128xf32>, vector<16x128xf32> -> vector<16x128xf32>
    %cst_11 = arith.constant dense<0.000000e+00> : vector<16xf32>
    %14 = vector.multi_reduction <add>, %13, %cst_11 [1] : vector<16x128xf32> to vector<16xf32>
    %15 = vector.shape_cast %14 : vector<16xf32> to vector<16x1xf32>
    %cst_12 = arith.constant 0.000000e+00 : f32
    %16 = vector.broadcast %cst_12 : f32 to vector<16x1xf32>
    %17 = arith.cmpf ogt, %15, %16 : vector<16x1xf32>
    %18 = arith.extui %17 : vector<16x1xi1> to vector<16x1xi32>
    %19 = arith.sitofp %18 : vector<16x1xi32> to vector<16x1xf32>
    %cst_13 = arith.constant 0.000000e+00 : f32
    %20 = vector.broadcast %cst_13 : f32 to vector<16x1xf32>
    %c0_14 = arith.constant 0 : index
    %c0_15 = arith.constant 0 : index
    %21 = vector.load %arg8[%c0_14, %c0_15] : memref<16x1xf32, #tpu.memory_space<vmem>>, vector<16x1xf32>
    tpu.vector_store %arg8[%c0_14, %c0_15], %20 {strides = array<i32>} : memref<16x1xf32, #tpu.memory_space<vmem>>, vector<16x1xf32>,
    %c0_16 = arith.constant 0 : index
    %c0_17 = arith.constant 0 : index
    %22 = vector.load %arg9[%c0_16, %c0_17] : memref<16x1xf32, #tpu.memory_space<vmem>>, vector<16x1xf32>
    tpu.vector_store %arg9[%c0_16, %c0_17], %19 {strides = array<i32>} : memref<16x1xf32, #tpu.memory_space<vmem>>, vector<16x1xf32>,
    %c0_i32 = arith.constant 0 : i32
    %23 = arith.cmpi ne, %1, %c0_i32 : i32
    %24 = arith.extui %23 : i1 to i32
    %c0_i32_18 = arith.constant 0 : i32
    %25 = arith.cmpi ne, %24, %c0_i32_18 : i32
    scf.if %25 {
      %cst_20 = arith.constant 0.000000e+00 : f32
      %29 = vector.broadcast %cst_20 : f32 to vector<16x128xf32>
      %30 = arith.maximumf %2, %29 : vector<16x128xf32>
      %31 = arith.mulf %2, %3 : vector<16x128xf32>
      %32 = arith.subf %30, %31 : vector<16x128xf32>
      %33 = math.absf %2 : vector<16x128xf32>
      %cst_21 = arith.constant 0.000000e+00 : f32
      %34 = vector.broadcast %cst_21 : f32 to vector<16x128xf32>
      %35 = arith.subf %34, %33 : vector<16x128xf32>
      %36 = math.exp %35 : vector<16x128xf32>
      %cst_22 = arith.constant 1.000000e+00 : f32
      %37 = vector.broadcast %cst_22 : f32 to vector<16x128xf32>
      %38 = arith.addf %37, %36 : vector<16x128xf32>
      %39 = math.log %38 : vector<16x128xf32>
      %40 = arith.addf %32, %39 : vector<16x128xf32>
      %41 = vector.broadcast %6 : vector<1x128xf32> to vector<16x128xf32>
      %42 = arith.mulf %40, %41 : vector<16x128xf32>
      %43 = arith.mulf %42, %13 : vector<16x128xf32>
      %cst_23 = arith.constant dense<0.000000e+00> : vector<16xf32>
      %44 = vector.multi_reduction <add>, %43, %cst_23 [1] : vector<16x128xf32> to vector<16xf32>
      %45 = vector.shape_cast %44 : vector<16xf32> to vector<16x1xf32>
      %cst_24 = arith.constant 1.000000e+00 : f32
      %46 = vector.broadcast %cst_24 : f32 to vector<16x1xf32>
      %47 = arith.maximumf %15, %46 : vector<16x1xf32>
      %48 = arith.divf %45, %47 : vector<16x1xf32>
      %c0_25 = arith.constant 0 : index
      %c0_26 = arith.constant 0 : index
      %49 = vector.load %arg8[%c0_25, %c0_26] : memref<16x1xf32, #tpu.memory_space<vmem>>, vector<16x1xf32>
      %cst_27 = arith.constant 0.000000e+00 : f32
      %50 = vector.broadcast %cst_27 : f32 to vector<16x1xf32>
      %51 = arith.cmpf ogt, %5, %50 : vector<16x1xf32>
      %cst_28 = arith.constant 0.000000e+00 : f32
      %52 = vector.broadcast %cst_28 : f32 to vector<16x1xf32>
      %53 = arith.select %51, %48, %52 : vector<16x1xi1>, vector<16x1xf32>
      %54 = arith.mulf %53, %19 : vector<16x1xf32>
      %55 = arith.addf %49, %54 : vector<16x1xf32>
      %c0_29 = arith.constant 0 : index
      %c0_30 = arith.constant 0 : index
      %56 = vector.load %arg8[%c0_29, %c0_30] : memref<16x1xf32, #tpu.memory_space<vmem>>, vector<16x1xf32>
      tpu.vector_store %arg8[%c0_29, %c0_30], %55 {strides = array<i32>} : memref<16x1xf32, #tpu.memory_space<vmem>>, vector<16x1xf32>,
    } else {
    }
    %c1_i32 = arith.constant 1 : i32
    %26 = arith.cmpi ne, %1, %c1_i32 : i32
    %27 = arith.extui %26 : i1 to i32
    %c0_i32_19 = arith.constant 0 : i32
    %28 = arith.cmpi ne, %27, %c0_i32_19 : i32
    scf.if %28 {
      %cst_20 = arith.constant 0.000000e+00 : f32
      %29 = vector.broadcast %cst_20 : f32 to vector<16x128xf32>
      %30 = arith.cmpf ogt, %13, %29 : vector<16x128xf32>
      %cst_21 = arith.constant -1.000000e+30 : f32
      %31 = vector.broadcast %cst_21 : f32 to vector<16x128xf32>
      %32 = arith.select %30, %2, %31 : vector<16x128xi1>, vector<16x128xf32>
      %cst_22 = arith.constant dense<0xFF800000> : vector<16xf32>
      %33 = vector.multi_reduction <maximumf>, %32, %cst_22 [1] : vector<16x128xf32> to vector<16xf32>
      %34 = vector.shape_cast %33 : vector<16xf32> to vector<16x1xf32>
      %cst_23 = arith.constant 0.000000e+00 : f32
      %35 = vector.broadcast %cst_23 : f32 to vector<16x1xf32>
      %36 = arith.cmpf ogt, %15, %35 : vector<16x1xf32>
      %cst_24 = arith.constant 0.000000e+00 : f32
      %37 = vector.broadcast %cst_24 : f32 to vector<16x1xf32>
      %38 = arith.select %36, %34, %37 : vector<16x1xi1>, vector<16x1xf32>
      %39 = vector.broadcast %38 : vector<16x1xf32> to vector<16x128xf32>
      %40 = arith.subf %2, %39 : vector<16x128xf32>
      %41 = math.exp %40 : vector<16x128xf32>
      %cst_25 = arith.constant 0.000000e+00 : f32
      %42 = vector.broadcast %cst_25 : f32 to vector<16x128xf32>
      %43 = arith.select %30, %41, %42 : vector<16x128xi1>, vector<16x128xf32>
      %cst_26 = arith.constant dense<0.000000e+00> : vector<16xf32>
      %44 = vector.multi_reduction <add>, %43, %cst_26 [1] : vector<16x128xf32> to vector<16xf32>
      %45 = vector.shape_cast %44 : vector<16xf32> to vector<16x1xf32>
      %cst_27 = arith.constant 1.000000e-30 : f32
      %46 = vector.broadcast %cst_27 : f32 to vector<16x1xf32>
      %47 = arith.maximumf %45, %46 : vector<16x1xf32>
      %48 = math.log %47 : vector<16x1xf32>
      %49 = arith.addf %38, %48 : vector<16x1xf32>
      %cst_28 = arith.constant -1.000000e+30 : f32
      %50 = vector.broadcast %cst_28 : f32 to vector<16x128xf32>
      %51 = arith.select %30, %3, %50 : vector<16x128xi1>, vector<16x128xf32>
      %cst_29 = arith.constant dense<0xFF800000> : vector<16xf32>
      %52 = vector.multi_reduction <maximumf>, %51, %cst_29 [1] : vector<16x128xf32> to vector<16xf32>
      %53 = vector.shape_cast %52 : vector<16xf32> to vector<16x1xf32>
      %54 = tpu.iota {dimensions = array<i32: 1>} : vector<16x128xi32>
      %55 = vector.broadcast %53 : vector<16x1xf32> to vector<16x128xf32>
      %56 = arith.cmpf oge, %3, %55 : vector<16x128xf32>
      %57 = arith.andi %30, %56 : vector<16x128xi1>
      %c128_i32 = arith.constant 128 : i32
      %58 = vector.broadcast %c128_i32 : i32 to vector<16x128xi32>
      %59 = arith.select %57, %54, %58 : vector<16x128xi1>, vector<16x128xi32>
      %cst_30 = arith.constant dense<2147483647> : vector<16xi32>
      %60 = vector.multi_reduction <minsi>, %59, %cst_30 [1] : vector<16x128xi32> to vector<16xi32>
      %61 = vector.shape_cast %60 : vector<16xi32> to vector<16x1xi32>
      %62 = vector.broadcast %61 : vector<16x1xi32> to vector<16x128xi32>
      %63 = arith.cmpi eq, %54, %62 : vector<16x128xi32>
      %cst_31 = arith.constant 0.000000e+00 : f32
      %64 = vector.broadcast %cst_31 : f32 to vector<16x128xf32>
      %65 = arith.select %63, %2, %64 : vector<16x128xi1>, vector<16x128xf32>
      %cst_32 = arith.constant dense<0.000000e+00> : vector<16xf32>
      %66 = vector.multi_reduction <add>, %65, %cst_32 [1] : vector<16x128xf32> to vector<16xf32>
      %67 = vector.shape_cast %66 : vector<16xf32> to vector<16x1xf32>
      %68 = arith.subf %49, %67 : vector<16x1xf32>
      %c0_33 = arith.constant 0 : index
      %c0_34 = arith.constant 0 : index
      %69 = vector.load %arg8[%c0_33, %c0_34] : memref<16x1xf32, #tpu.memory_space<vmem>>, vector<16x1xf32>
      %cst_35 = arith.constant 0.000000e+00 : f32
      %70 = vector.broadcast %cst_35 : f32 to vector<16x1xf32>
      %71 = arith.cmpf ogt, %5, %70 : vector<16x1xf32>
      %cst_36 = arith.constant 0.000000e+00 : f32
      %72 = vector.broadcast %cst_36 : f32 to vector<16x1xf32>
      %73 = arith.select %71, %72, %68 : vector<16x1xi1>, vector<16x1xf32>
      %74 = arith.mulf %73, %19 : vector<16x1xf32>
      %75 = arith.addf %69, %74 : vector<16x1xf32>
      %c0_37 = arith.constant 0 : index
      %c0_38 = arith.constant 0 : index
      %76 = vector.load %arg8[%c0_37, %c0_38] : memref<16x1xf32, #tpu.memory_space<vmem>>, vector<16x1xf32>
      tpu.vector_store %arg8[%c0_37, %c0_38], %75 {strides = array<i32>} : memref<16x1xf32, #tpu.memory_space<vmem>>, vector<16x1xf32>,
    } else {
    }
    return
  }
  func.func @transform_0(%arg0: i32, %arg1: memref<1xi32, #tpu.memory_space<smem>>) -> (i32, i32) {
    %c0_i32 = arith.constant 0 : i32
    %c0_i32_0 = arith.constant 0 : i32
    return %arg0, %c0_i32 : i32, i32
  }
  func.func @transform_1(%arg0: i32, %arg1: memref<1xi32, #tpu.memory_space<smem>>) -> (i32, i32) {
    %c0_i32 = arith.constant 0 : i32
    %c0_i32_0 = arith.constant 0 : i32
    return %arg0, %c0_i32 : i32, i32
  }
  func.func @transform_2(%arg0: i32, %arg1: memref<1xi32, #tpu.memory_space<smem>>) -> (i32, i32) {
    %c0_i32 = arith.constant 0 : i32
    %c0_i32_0 = arith.constant 0 : i32
    return %arg0, %c0_i32 : i32, i32
  }
  func.func @transform_3(%arg0: i32, %arg1: memref<1xi32, #tpu.memory_space<smem>>) -> (i32, i32) {
    %c0_i32 = arith.constant 0 : i32
    %c0_i32_0 = arith.constant 0 : i32
    return %arg0, %c0_i32 : i32, i32
  }
  func.func @transform_4(%arg0: i32, %arg1: memref<1xi32, #tpu.memory_space<smem>>) -> (i32, i32) {
    %c0_i32 = arith.constant 0 : i32
    %c0_i32_0 = arith.constant 0 : i32
    %c0_i32_1 = arith.constant 0 : i32
    return %c0_i32, %c0_i32_0 : i32, i32
  }
  func.func @transform_5(%arg0: i32, %arg1: memref<1xi32, #tpu.memory_space<smem>>) -> (i32, i32) {
    %c0_i32 = arith.constant 0 : i32
    %c0_i32_0 = arith.constant 0 : i32
    %c0_i32_1 = arith.constant 0 : i32
    return %c0_i32, %c0_i32_0 : i32, i32
  }
  func.func @transform_6(%arg0: i32, %arg1: memref<1xi32, #tpu.memory_space<smem>>) -> (i32, i32) {
    %c0_i32 = arith.constant 0 : i32
    %c0_i32_0 = arith.constant 0 : i32
    return %arg0, %c0_i32 : i32, i32
  }
  func.func @transform_7(%arg0: i32, %arg1: memref<1xi32, #tpu.memory_space<smem>>) -> (i32, i32) {
    %c0_i32 = arith.constant 0 : i32
    %c0_i32_0 = arith.constant 0 : i32
    return %arg0, %c0_i32 : i32, i32
  }
}

</mosaic_0001>

<bundles_post_ra>
// kernel: tpu_custom_call.1
= control target key start
LH: loop header
LB: loop body
LE: loop exit
PB: predicated region body
PF: predicated region fallthrough
CT: control target
= control target key end

     0   :  { %15 = vsyncpa [#allocation5], 0  ;;  %s445_s27 = smov [#allocation4]   ;;  %s674_s0 = inlined_call_operand.<no memory space> [shape: s32[1], index: 0, kind: input, shape index: {}]   ;;  %s675_s1 = inlined_call_operand.vmem [shape: s32[16,1], index: 1, kind: input, shape index: {}]   ;;  %s676_s2 = inlined_call_operand.vmem [shape: f32[16,1], index: 2, kind: input, shape index: {}]   ;;  %s677_s3 = inlined_call_operand.vmem [shape: f32[16,128], index: 3, kind: input, shape index: {}]   ;;  %s678_s4 = inlined_call_operand.vmem [shape: f32[16,128], index: 4, kind: input, shape index: {}]   ;;  %s679_s5 = inlined_call_operand.hbm [shape: f32[128,128], index: 5, kind: input, shape index: {}]   ;;  %s680_s6 = inlined_call_operand.vmem [shape: f32[1,128], index: 6, kind: input, shape index: {}]   ;;  %s681_s7 = inlined_call_operand.vmem [shape: f32[16,1], index: 7, kind: output, shape index: {0}]   ;;  %s682_s8 = inlined_call_operand.vmem [shape: f32[16,1], index: 8, kind: output, shape index: {1}]  }
   0x1   :  { %s29_s28 = sshll.u32 %s445_s27, 4  ;;  %s30_s28 = int_to_ptr.vmem [resolvable:$true] %s29_s28 }
   0x2   :  { %s431_s29 = scalar_lea.vmem %s30_s28, 2048  ;;  %p436_p1 = scmp.lt.s32.totalorder %s30_s28, %s30_s28 }
   0x3   :  { %p432_p0 = scmp.ne.s32.totalorder %s30_s28, %s431_s29  ;;  %p437_p2 = scmp.lt.s32.totalorder %s431_s29, %s431_s29 }
   0x5   :  { %p438_p3 = por %p437_p2, %p436_p1 }
   0x7   :  { %p439_p4 = pnand %p438_p3, %p432_p0 }
   0x9   :  { %442 = shalt.err (!%p439_p4)
}
   0xa   :  { %s446_s30 = smov 128   ;;  %s447_s9 = smov 8  }
   0xb   :  { %35 = dma.hbm_to_vmem [thread:$0]  %s679_s5, 2048, %s30_s28, [#allocation5], %s446_s30, %s446_s30, %s447_s9  }
   0xc   :  { %443 = dma.done.wait [#allocation5], 2048  }
   0xd   :  { %444 = vsyncadd [#allocation5], 4294965248  ;;  %v448_v0 = vmov 0   ;;  %v502_v1 = vld [vmem:[%s677_s3] sm:$0xff]  ;;  %v507_v2 = vld [vmem:[%s677_s3 + $0x8] sm:$0xff]  ;;  %v51_v26 = vlaneseq  ;;  %v449_v29 = vmov 1.0  }
   0xe   :  { %402 = vset.pattern.permute.xlu0 %v448_v0  ;;  %v512_v3 = vld [vmem:[%s678_s4] sm:$0xff]  ;;  %v517_v4 = vld [vmem:[%s678_s4 + $0x8] sm:$0xff]  ;;  %v80_v9 = vld [vmem:[#allocation4 + $0x78] sm:$0xff]  ;;  %vm166_vm2 = vcmask 7168   ;;  %v450_v31 = vmov 0.0   ;;  %p340_p5 = scmp.eq.s32.totalorder %s674_s0, 0 }
   0xf   :  { %v522_v5 = vld [vmem:[%s676_s2] sm:$0xff]  ;;  %v527_v6 = vld [vmem:[%s676_s2 + $0x8] sm:$0xff]  ;;  %v79_v10 = vld [vmem:[#allocation4 + $0x70] sm:$0xff]  ;;  %361 = vmatprep.subr.mxu0 %v80_v9  ;;  %v540_v27 = vand.u32 127, %v51_v26  ;;  %167 = vst.msk [vmem:[%s681_s7] sm:$0xff] %vm166_vm2, %v450_v31 }
  0x10   :  { %v532_v7 = vld [vmem:[%s680_s6] ss:$0 sm:$0xff]  ;;  %v47_v11 = vld [vmem:[%s675_s1 + $0x8] sm:$0xff]  ;;  %362 = vmatpush3.msra.mxu0 %v80_v9  ;;  %v76_v14 = vld [vmem:[#allocation4 + $0x58] sm:$0xff]  ;;  %168 = vst.msk [vmem:[%s681_s7 + $0x8] sm:$0xff] %vm166_vm2, %v450_v31 }
  0x11   :  { %v46_v8 = vld [vmem:[%s675_s1] sm:$0xff]  ;;  %v78_v12 = vld [vmem:[#allocation4 + $0x68] sm:$0xff]  ;;  %363 = vmatprep.subr.mxu0 %v79_v10  ;;  %v75_v15 = vld [vmem:[#allocation4 + $0x50] sm:$0xff] }
  0x12   :  { %54 = vperm.xlu0 %402, %v46_v8   ;;  %364 = vmatpush3.msra.mxu0 %v79_v10  ;;  %v77_v13 = vld [vmem:[#allocation4 + $0x60] sm:$0xff]  ;;  %v74_v16 = vld [vmem:[#allocation4 + $0x48] sm:$0xff]  ;;  %v72_v18 = vld [vmem:[#allocation4 + $0x38] sm:$0xff] }
  0x13   :  { %365 = vmatprep.subr.mxu0 %v78_v12  ;;  %v73_v17 = vld [vmem:[#allocation4 + $0x40] sm:$0xff]  ;;  %v71_v19 = vld [vmem:[#allocation4 + $0x30] sm:$0xff]  ;;  %v70_v20 = vld [vmem:[#allocation4 + $0x28] sm:$0xff] }
  0x14   :  { %366 = vmatpush3.msra.mxu0 %v78_v12  ;;  %v69_v21 = vld [vmem:[#allocation4 + $0x20] sm:$0xff]  ;;  %v68_v22 = vld [vmem:[#allocation4 + $0x18] sm:$0xff]  ;;  %v67_v23 = vld [vmem:[#allocation4 + $0x10] sm:$0xff] }
  0x15   :  { %367 = vmatprep.subr.mxu0 %v77_v13  ;;  %v66_v24 = vld [vmem:[#allocation4 + $0x8] sm:$0xff]  ;;  %v65_v25 = vld [vmem:[#allocation4] sm:$0xff] }
  0x16   :  { %57 = vperm.xlu0 %402, %v47_v11   ;;  %368 = vmatpush3.msra.mxu0 %v77_v13 }
  0x17   :  { %369 = vmatprep.subr.mxu0 %v76_v14 }
  0x18   :  { %370 = vmatpush3.msra.mxu0 %v76_v14 }
  0x19   :  { %371 = vmatprep.subr.mxu0 %v75_v15 }
  0x1a   :  { %372 = vmatpush3.msra.mxu0 %v75_v15 }
  0x1b   :  { %373 = vmatprep.subr.mxu0 %v74_v16 }
  0x1c   :  { %374 = vmatpush3.msra.mxu0 %v74_v16 }
  0x1d   :  { %375 = vmatprep.subr.mxu0 %v73_v17 }
  0x1e   :  { %376 = vmatpush3.msra.mxu0 %v73_v17 }
  0x1f   :  { %377 = vmatprep.subr.mxu0 %v72_v18 }
  0x20   :  { %378 = vmatpush3.msra.mxu0 %v72_v18 }
  0x21   :  { %379 = vmatprep.subr.mxu0 %v71_v19 }
  0x22   :  { %380 = vmatpush3.msra.mxu0 %v71_v19 }
  0x23   :  { %381 = vmatprep.subr.mxu0 %v70_v20 }
  0x24   :  { %382 = vmatpush3.msra.mxu0 %v70_v20 }
  0x25   :  { %383 = vmatprep.subr.mxu0 %v69_v21 }
  0x26   :  { %384 = vmatpush3.msra.mxu0 %v69_v21 }
  0x27   :  { %385 = vmatprep.subr.mxu0 %v68_v22 }
  0x28   :  { %386 = vmatpush3.msra.mxu0 %v68_v22 }
  0x29   :  { %387 = vmatprep.subr.mxu0 %v67_v23 }
  0x2a   :  { %388 = vmatpush3.msra.mxu0 %v67_v23 }
  0x2b   :  { %389 = vmatprep.subr.mxu0 %v66_v24 }
  0x2c   :  { %390 = vmatpush3.msra.mxu0 %v66_v24 }
  0x2d   :  { %391 = vmatprep.subr.mxu0 %v65_v25 }
  0x2e   :  { %392 = vmatpush3.msra.mxu0 %v65_v25 }
  0x8d   :  { %v55_v28 = vpop.permute.xlu0 %54 }
  0x8e   :  { %vm59_vm0 = vcmp.eq.s32.totalorder %v55_v28, %v540_v27 }
  0x8f   :  { %393 = vmatprep.mubr.msk.f32.mxu0 %vm59_vm0, %v449_v29 }
  0x91   :  { %v58_v30 = vpop.permute.xlu0 %57 }
  0x92   :  { %vm60_vm1 = vcmp.eq.s32.totalorder %v58_v30, %v540_v27 }
  0x93   :  { %394 = vmatmul.mubr.msk.f32.vlgmr.msra.gmra.mxu0 %vm60_vm1, %v449_v29 }
 0x153   :  { %v552_v32 = vpop.f32.mrf.mxu0 }
 0x155   :  { %v554_v33 = vpop.f32.mrf.mxu0 }
 0x156   :  { %156 = vadd.xlane.f32.xlu1 %v554_v33 }
 0x15a   :  { %158 = vadd.xlane.f32.xlu1 %v552_v32 }
 0x1df   :  { %v558_v34 = vpop.xlane.xlu1 %156 }
 0x1e0   :  { %vm160_vm3 = vcmp.gt.f32.partialorder %v558_v34, 0.0 }
 0x1e1   :  { %v563_v35 = vsel %vm160_vm3, 1.0, %v450_v31 }
 0x1e2   :  { %169 = vst.msk [vmem:[%s682_s8] sm:$0xff] %vm166_vm2, %v563_v35  ;;  %174 = sbr.rel (%p340_p5) target bundleno = 681 (0x2a9), region = 33 }
 0x1e3   :  { %v570_v36 = vpop.xlane.xlu1 %158 }
 0x1e4   :  { %vm161_vm4 = vcmp.gt.f32.partialorder %v570_v36, 0.0 }
 0x1e5   :  { %v575_v37 = vsel %vm161_vm4, 1.0, %v450_v31 }
 0x1e6   :  { %170 = vst.msk [vmem:[%s682_s8 + $0x8] sm:$0xff] %vm166_vm2, %v575_v37 }
 0x1e7   :  { %v181_v38 = vand.u32 2147483647, %v502_v1  ;;  %v182_v39 = vand.u32 2147483647, %v507_v2  ;;  %v175_v48 = vmax.f32 %v502_v1, 0.0  ;;  %v177_v49 = vmul.f32 %v512_v3, %v502_v1  ;;  %v218_v18 = vld [vmem:[%s681_s7 + $0x8] sm:$0xff] }
 0x1e8   :  { %v176_v50 = vmax.f32 %v507_v2, 0.0  ;;  %v178_v51 = vmul.f32 %v517_v4, %v507_v2  ;;  %v211_v0 = vmax.f32 %v558_v34, 1.0  ;;  %v212_v8 = vmax.f32 %v570_v36, 1.0 }
 0x1e9   :  { %v183_v40 = vsub.f32 0.0, %v181_v38  ;;  %v184_v41 = vsub.f32 0.0, %v182_v39  ;;  %v179_v52 = vsub.f32 %v175_v48, %v177_v49  ;;  %vm219_vm5 = vcmp.gt.f32.partialorder %v522_v5, 0.0 }
 0x1ea   :  { %v180_v54 = vsub.f32 %v176_v50, %v178_v51  ;;  %vm220_vm6 = vcmp.gt.f32.partialorder %v527_v6, 0.0 }
 0x1eb   :  { %v185_v42 = vmul.f32 1.442695, %v183_v40  ;;  %v187_v43 = vmul.f32 1.442695, %v184_v41 }
 0x1ed   :  { %403 = vpow2.f32 %v185_v42 }
 0x1ee   :  { %405 = vpow2.f32 %v187_v43 }
 0x1fa   :  { %v404_v44 = vpop.eup %403 }
 0x1fb   :  { %v406_v45 = vpop.eup %405  ;;  %v189_v46 = vadd.f32 1.0, %v404_v44 }
 0x1fc   :  { %v190_v47 = vadd.f32 1.0, %v406_v45 }
 0x1fd   :  { %407 = vlog2.f32 %v189_v46 }
 0x1fe   :  { %409 = vlog2.f32 %v190_v47 }
 0x1ff   :  { %411 = vrcp.f32 %v211_v0 }
 0x200   :  { %413 = vrcp.f32 %v212_v8 }
 0x20a   :  { %v408_v53 = vpop.eup %407 }
 0x20b   :  { %v410_v55 = vpop.eup %409  ;;  %v192_v56 = vmul.f32 0.6931472, %v408_v53 }
 0x20c   :  { %v194_v57 = vmul.f32 0.6931472, %v410_v55  ;;  %v412_v9 = vpop.eup %411 }
 0x20d   :  { %v195_v58 = vadd.f32 %v192_v56, %v179_v52  ;;  %v414_v12 = vpop.eup %413 }
 0x20e   :  { %v196_v59 = vadd.f32 %v194_v57, %v180_v54 }
 0x20f   :  { %v203_v60 = vmul.f32 %v532_v7, %v195_v58 }
 0x210   :  { %v204_v61 = vmul.f32 %v532_v7, %v196_v59  ;;  %v217_v7 = vld [vmem:[%s681_s7] sm:$0xff] }
 0x211   :  { %v205_v62 = vmul.f32 %v203_v60, %v554_v33 }
 0x212   :  { %v206_v63 = vmul.f32 %v552_v32, %v204_v61 }
 0x213   :  { %207 = vadd.xlane.f32.xlu0 %v205_v62 }
 0x217   :  { %209 = vadd.xlane.f32.xlu0 %v206_v63 }
 0x29c   :  { %v208_v10 = vpop.xlane.xlu0 %207 }
 0x29d   :  { %v214_v11 = vmul.f32 %v412_v9, %v208_v10 }
 0x29f   :  { %v221_v13 = vsel %vm219_vm5, %v214_v11, 0.0 }
 0x2a0   :  { %v223_v14 = vmul.f32 %v563_v35, %v221_v13  ;;  %v210_v15 = vpop.xlane.xlu0 %209 }
 0x2a1   :  { %v216_v16 = vmul.f32 %v414_v12, %v210_v15 }
 0x2a2   :  { %v225_v17 = vadd.f32 %v223_v14, %v217_v7 }
 0x2a3   :  { %v222_v19 = vsel %vm220_vm6, %v216_v16, 0.0 }
 0x2a4   :  { %227 = vst.msk [vmem:[%s681_s7] sm:$0xff] %vm166_vm2, %v225_v17  ;;  %v224_v20 = vmul.f32 %v575_v37, %v222_v19 }
 0x2a6   :  { %v226_v21 = vadd.f32 %v224_v20, %v218_v18 }
 0x2a8   :  { %228 = vst.msk [vmem:[%s681_s7 + $0x8] sm:$0xff] %vm166_vm2, %v226_v21 }
 0x2a9 PF:  { %p342_p6 = scmp.eq.s32.totalorder %s674_s0, 1 }
 0x2ab   :  { %232 = sbr.rel (%p342_p6) target bundleno = 1269 (0x4f5), region = 37 }
 0x2b0   :  { %vm233_vm7 = vcmp.gt.f32.partialorder %v554_v33, 0.0  ;;  %vm234_vm8 = vcmp.gt.f32.partialorder %v552_v32, 0.0  ;;  %vm315_vm1 = vcmp.gt.f32.partialorder %v522_v5, 0.0 }
 0x2b1   :  { %v263_v22 = vsel %vm233_vm7, %v512_v3, -1e+30  ;;  %v264_v23 = vsel %vm234_vm8, %v517_v4, -1e+30  ;;  %v235_v24 = vsel %vm233_vm7, %v502_v1, -1e+30 }
 0x2b2   :  { %265 = vmax.xlane.f32.xlu0 %v263_v22 }
 0x2b6   :  { %267 = vmax.xlane.f32.xlu0 %v264_v23 }
 0x2ba   :  { %237 = vmax.xlane.f32.xlu0 %v235_v24  ;;  %v314_v24 = vld [vmem:[%s681_s7 + $0x8] sm:$0xff] }
 0x33b   :  { %v266_v25 = vpop.xlane.xlu0 %265 }
 0x33c   :  { %vm269_vm9 = vcmp.ge.f32.partialorder %v512_v3, %v266_v25  ;;  %v236_v3 = vsel %vm234_vm8, %v507_v2, -1e+30 }
 0x33d   :  { %vm271_vm10 = vmand %vm233_vm7, %vm269_vm9 }
 0x33e   :  { %v273_v26 = vsel %vm271_vm10, %v540_v27, 128 }
 0x33f   :  { %v268_v28 = vpop.xlane.xlu0 %267  ;;  %v276_v29 = vshra.s32 %v273_v26, 16  ;;  %v275_v43 = vand.u32 65535, %v273_v26 }
 0x340   :  { %vm270_vm11 = vcmp.ge.f32.partialorder %v517_v4, %v268_v28 }
 0x341   :  { %vm272_vm12 = vmand %vm234_vm8, %vm270_vm11  ;;  %v278_v30 = vcvt.s32.f32 %v276_v29  ;;  %v277_v46 = vcvt.s32.f32 %v275_v43 }
 0x342   :  { %v274_v31 = vsel %vm272_vm12, %v540_v27, 128 }
 0x343   :  { %279 = vmin.xlane.f32.xlu1 %v278_v30  ;;  %v290_v38 = vshra.s32 %v274_v31, 16  ;;  %v238_v40 = vpop.xlane.xlu0 %237  ;;  %v289_v44 = vand.u32 65535, %v274_v31 }
 0x344   :  { %v241_v41 = vsel %vm160_vm3, %v238_v40, 0.0  ;;  %vm316_vm3 = vcmp.gt.f32.partialorder %v527_v6, 0.0 }
 0x345   :  { %v292_v39 = vcvt.s32.f32 %v290_v38  ;;  %v243_v4 = vsub.f32 %v502_v1, %v241_v41  ;;  %v291_v50 = vcvt.s32.f32 %v289_v44 }
 0x347   :  { %293 = vmin.xlane.f32.xlu1 %v292_v39  ;;  %v245_v42 = vmul.f32 1.442695, %v243_v4 }
 0x349   :  { %415 = vpow2.f32 %v245_v42 }
 0x34b   :  { %239 = vmax.xlane.f32.xlu1 %v236_v3 }
 0x356   :  { %v416_v47 = vpop.eup %415 }
 0x357   :  { %v249_v51 = vsel %vm233_vm7, %v416_v47, 0.0 }
 0x3cc   :  { %v280_v45 = vpop.xlane.xlu1 %279 }
 0x3cd   :  { %vm281_vm13 = vcmp.eq.f32.partialorder %v278_v30, %v280_v45  ;;  %v286_v58 = vcvt.f32.s32 %v280_v45 }
 0x3ce   :  { %v282_v48 = vsel %vm281_vm13, %v277_v46, inf }
 0x3cf   :  { %283 = vmin.xlane.f32.xlu0 %v282_v48  ;;  %v287_v59 = vshll.u32 %v286_v58, 16 }
 0x3d0   :  { %v294_v49 = vpop.xlane.xlu1 %293 }
 0x3d1   :  { %vm295_vm14 = vcmp.eq.f32.partialorder %v292_v39, %v294_v49  ;;  %v300_v60 = vcvt.f32.s32 %v294_v49 }
 0x3d2   :  { %v296_v34 = vsel %vm295_vm14, %v291_v50, inf }
 0x3d3   :  { %297 = vmin.xlane.f32.xlu1 %v296_v34  ;;  %251 = vadd.xlane.f32.xlu0 %v249_v51  ;;  %v301_v0 = vshll.u32 %v300_v60, 16 }
 0x3d4   :  { %v240_v52 = vpop.xlane.xlu1 %239 }
 0x3d5   :  { %v242_v53 = vsel %vm161_vm4, %v240_v52, 0.0 }
 0x3d6   :  { %v244_v54 = vsub.f32 %v507_v2, %v242_v53 }
 0x3d8   :  { %v247_v55 = vmul.f32 1.442695, %v244_v54 }
 0x3da   :  { %417 = vpow2.f32 %v247_v55 }
 0x3e7   :  { %v418_v56 = vpop.eup %417 }
 0x3e8   :  { %v250_v57 = vsel %vm234_vm8, %v418_v56, 0.0 }
 0x3e9   :  { %253 = vadd.xlane.f32.xlu1 %v250_v57 }
 0x458   :  { %v284_v33 = vpop.xlane.xlu0 %283 }
 0x459   :  { %v285_v61 = vcvt.f32.s32 %v284_v33 }
 0x45b   :  { %v288_v62 = vadd.s32 %v287_v59, %v285_v61 }
 0x45c   :  { %v298_v63 = vpop.xlane.xlu1 %297  ;;  %v252_v10 = vpop.xlane.xlu0 %251 }
 0x45d   :  { %v299_v8 = vcvt.f32.s32 %v298_v63  ;;  %vm303_vm15 = vcmp.eq.s32.totalorder %v540_v27, %v288_v62  ;;  %v255_v11 = vmax.f32 %v252_v10, 1e-30 }
 0x45e   :  { %v305_v36 = vsel %vm303_vm15, %v502_v1, 0.0 }
 0x45f   :  { %307 = vadd.xlane.f32.xlu0 %v305_v36  ;;  %v302_v9 = vadd.s32 %v301_v0, %v299_v8  ;;  %419 = vlog2.f32 %v255_v11 }
 0x461   :  { %vm304_vm0 = vcmp.eq.s32.totalorder %v540_v27, %v302_v9 }
 0x462   :  { %v306_v32 = vsel %vm304_vm0, %v507_v2, 0.0  ;;  %v313_v2 = vld [vmem:[%s681_s7] sm:$0xff] }
 0x463   :  { %309 = vadd.xlane.f32.xlu1 %v306_v32 }
 0x46c   :  { %v420_v13 = vpop.eup %419 }
 0x46d   :  { %v258_v14 = vmul.f32 0.6931472, %v420_v13 }
 0x46f   :  { %v261_v16 = vadd.f32 %v258_v14, %v241_v41 }
 0x472   :  { %v254_v12 = vpop.xlane.xlu1 %253 }
 0x473   :  { %v256_v7 = vmax.f32 %v254_v12, 1e-30 }
 0x475   :  { %421 = vlog2.f32 %v256_v7 }
 0x482   :  { %v422_v15 = vpop.eup %421 }
 0x483   :  { %v260_v17 = vmul.f32 0.6931472, %v422_v15 }
 0x485   :  { %v262_v19 = vadd.f32 %v260_v17, %v242_v53 }
 0x4e8   :  { %v308_v1 = vpop.xlane.xlu0 %307 }
 0x4e9   :  { %v311_v18 = vsub.f32 %v261_v16, %v308_v1 }
 0x4eb   :  { %v317_v27 = vsel %vm315_vm1, 0.0, %v311_v18 }
 0x4ec   :  { %v319_v20 = vmul.f32 %v563_v35, %v317_v27  ;;  %v310_v21 = vpop.xlane.xlu1 %309 }
 0x4ed   :  { %v312_v22 = vsub.f32 %v262_v19, %v310_v21 }
 0x4ee   :  { %v321_v23 = vadd.f32 %v319_v20, %v313_v2 }
 0x4ef   :  { %v318_v5 = vsel %vm316_vm3, 0.0, %v312_v22 }
 0x4f0   :  { %323 = vst.msk [vmem:[%s681_s7] sm:$0xff] %vm166_vm2, %v321_v23  ;;  %v320_v25 = vmul.f32 %v575_v37, %v318_v5 }
 0x4f2   :  { %v322_v26 = vadd.f32 %v320_v25, %v314_v24 }
 0x4f4   :  { %324 = vst.msk [vmem:[%s681_s7 + $0x8] sm:$0xff] %vm166_vm2, %v322_v26 }
 0x4f5 PF:  { %333 = vsyncpa [#allocation5], 1 }

</bundles_post_ra>
